<compile_context>
chip_gen: v7x
topology: tpu7x:2x2x1
jax: 0.10.0
libtpu: 0.0.40
codegen_flags: <defaults>
</compile_context>

<pallas_src>
import math

import jax
import jax.numpy as jnp
from jax.experimental import pallas as pl
from jax.experimental.pallas import tpu as pltpu


# ---------------------------------------------------------------------------
# Kernel 1: tiled, pipelined fused QKV projection  o = x @ w + b
#   grid = (M/tm, 3D/tn, D/tk); f32 VMEM accumulator scratch; init at k==0,
#   bias-add + cast on the last k step.  M/N axes 'parallel', K 'arbitrary'.
# ---------------------------------------------------------------------------
def _qkv_proj_kernel(x_ref, w_ref, b_ref, o_ref, acc_ref):
    k = pl.program_id(2)

    @pl.when(k == 0)
    def _init():
        acc_ref[...] = jnp.zeros_like(acc_ref)

    acc_ref[...] += jnp.dot(
        x_ref[...], w_ref[...], preferred_element_type=jnp.float32
    )

    @pl.when(k == pl.num_programs(2) - 1)
    def _finalize():
        o_ref[...] = (acc_ref[...] + b_ref[...].astype(jnp.float32)).astype(o_ref.dtype)


def _fit_tile(dim, target):
    # Use the target tile when it evenly divides the axis; otherwise fall back to
    # the full axis (toy shapes), which is exempt from the (8,128) block rule.
    return target if dim % target == 0 else dim


def qkv_projection(x2d, w, b_row, *, tm=256, tn=256, tk=512):
    # Tile targets: 256-granular for v6e/v7x (2x256^2 MXU); drop to 128/256 on v5e.
    M, D = x2d.shape
    D3 = w.shape[1]
    tm, tn, tk = _fit_tile(M, tm), _fit_tile(D3, tn), _fit_tile(D, tk)
    grid = (M // tm, D3 // tn, D // tk)
    itemsize = x2d.dtype.itemsize
    return pl.pallas_call(
        _qkv_proj_kernel,
        out_shape=jax.ShapeDtypeStruct((M, D3), x2d.dtype),
        grid=grid,
        in_specs=[
            pl.BlockSpec((tm, tk), lambda i, j, k: (i, k)),
            pl.BlockSpec((tk, tn), lambda i, j, k: (k, j)),
            pl.BlockSpec((1, tn), lambda i, j, k: (0, j)),
        ],
        out_specs=pl.BlockSpec((tm, tn), lambda i, j, k: (i, j)),
        scratch_shapes=[pltpu.VMEM((tm, tn), jnp.float32)],
        compiler_params=pltpu.CompilerParams(
            dimension_semantics=("parallel", "parallel", "arbitrary"),
            # explicit, conservative across gens (v7x has only 64 MiB physical VMEM)
            vmem_limit_bytes=32 * 1024 * 1024,
        ),
        cost_estimate=pl.CostEstimate(
            flops=2 * M * D * D3,
            transcendentals=0,
            bytes_accessed=int((M * D + D * D3 + M * D3 + D3) * itemsize),
        ),
    )(x2d, w, b_row)


# ---------------------------------------------------------------------------
# Kernel 2: fused flash-style causal attention over the packed (B, N, 3D) qkv
# buffer.  Grid = (B, N/blk, N/blk) with the KV axis last ('arbitrary').
#   - all heads of a (batch, q-tile) are processed together; q/v/k are sliced
#     directly out of the packed buffer (no wrapper split / head transposes)
#   - causal block skip: kv blocks strictly above the diagonal are not computed
#   - scores via lax.dot_general contracting the last dims (no k.T transpose)
#   - 1/sqrt(d) folded into q; softmax normalization deferred to a single
#     reciprocal * (blk, d) multiply at finalize
#   - output written directly in (B, N, D) concatenated-head (lane-dense) layout
# ---------------------------------------------------------------------------
def _make_attn_kernel(head_num, dim, blk):
    d = dim // head_num
    scale = 1.0 / math.sqrt(d)
    qk_dims = (((1,), (1,)), ((), ()))  # contract last dim of q with last dim of k
    pv_dims = (((1,), (0,)), ((), ()))

    def kernel(q_ref, kv_ref, o_ref, m_ref, l_ref, acc_ref):
        q_i = pl.program_id(1)
        kv_i = pl.program_id(2)

        @pl.when(kv_i == 0)
        def _init():
            m_ref[...] = jnp.full_like(m_ref, -jnp.inf)
            l_ref[...] = jnp.zeros_like(l_ref)
            acc_ref[...] = jnp.zeros_like(acc_ref)

        # Causal block skip: ~2x fewer MXU FLOPs for long sequences.
        @pl.when(kv_i <= q_i)
        def _compute():
            q_all = q_ref[0]    # (blk, 3*dim): packed [q | v | k], all heads
            kv_all = kv_ref[0]  # (blk, 3*dim)
            row = jax.lax.broadcasted_iota(jnp.int32, (blk, blk), 0)
            col = jax.lax.broadcasted_iota(jnp.int32, (blk, blk), 1)
            # Only the diagonal block (kv_i == q_i, tq == tk) is actually masked;
            # strictly-below blocks fold to all-visible.
            visible = jnp.logical_or(kv_i < q_i, col <= row)
            for h in range(head_num):
                # chunk order matches PyTorch `q, v, k = chunk(qvk)`
                q_h = q_all[:, h * d:(h + 1) * d].astype(jnp.float32) * scale
                v_h = kv_all[:, dim + h * d:dim + (h + 1) * d].astype(jnp.float32)
                k_h = kv_all[:, 2 * dim + h * d:2 * dim + (h + 1) * d].astype(jnp.float32)
                s = jax.lax.dot_general(
                    q_h, k_h, qk_dims, preferred_element_type=jnp.float32)
                s = jnp.where(visible, s, jnp.float32(-1e9))
                m_prev = m_ref[h]                                       # (blk, 1)
                m_new = jnp.maximum(m_prev, jnp.max(s, axis=-1, keepdims=True))
                alpha = jnp.exp(m_prev - m_new)
                p = jnp.exp(s - m_new)
                l_ref[h] = alpha * l_ref[h] + jnp.sum(p, axis=-1, keepdims=True)
                acc_ref[h] = alpha * acc_ref[h] + jax.lax.dot_general(
                    p, v_h, pv_dims, preferred_element_type=jnp.float32)
                m_ref[h] = m_new

        @pl.when(kv_i == pl.num_programs(2) - 1)
        def _finalize():
            outs = []
            for h in range(head_num):
                # Deferred softmax normalization. approx=True would push this to the
                # EUP slot for free, but exact keeps the 1e-5 reference tolerance.
                inv_l = pl.reciprocal(l_ref[h], approx=False)
                outs.append(acc_ref[h] * inv_l)
            # single lane-dense store of the concatenated-head output block
            o_ref[0] = jnp.concatenate(outs, axis=-1).astype(o_ref.dtype)

    return kernel


def causal_full_attention_fused(qkv, head_num):
    B, N, D3 = qkv.shape
    dim = D3 // 3
    d = dim // head_num
    blk = 128 if N % 128 == 0 else N          # flash tile along the sequence
    n_blk = N // blk
    itemsize = qkv.dtype.itemsize
    # q block last dim = 3*dim (full axis -> layout-exempt); the q chunk is sliced
    # in-kernel, trading a slightly wider (resident) q DMA for zero wrapper
    # split/transpose traffic through HBM.
    q_spec = pl.BlockSpec((1, blk, D3), lambda b, qi, ki: (b, qi, 0))
    kv_spec = pl.BlockSpec((1, blk, D3), lambda b, qi, ki: (b, ki, 0))
    o_spec = pl.BlockSpec((1, blk, dim), lambda b, qi, ki: (b, qi, 0))
    return pl.pallas_call(
        _make_attn_kernel(head_num, dim, blk),
        out_shape=jax.ShapeDtypeStruct((B, N, dim), qkv.dtype),
        grid=(B, n_blk, n_blk),
        in_specs=[q_spec, kv_spec],
        out_specs=o_spec,
        scratch_shapes=[
            pltpu.VMEM((head_num, blk, 1), jnp.float32),   # running max m
            pltpu.VMEM((head_num, blk, 1), jnp.float32),   # running sum l
            pltpu.VMEM((head_num, blk, d), jnp.float32),   # f32 output accumulator
        ],
        compiler_params=pltpu.CompilerParams(
            dimension_semantics=("parallel", "parallel", "arbitrary"),
            vmem_limit_bytes=32 * 1024 * 1024,
        ),
        cost_estimate=pl.CostEstimate(
            flops=4 * B * head_num * N * N * d,
            transcendentals=B * head_num * N * N,
            bytes_accessed=int((B * N * D3 + B * N * dim) * itemsize),
        ),
    )(qkv, qkv)


# ---------------------------------------------------------------------------
# Module-equivalent forward: MultiHeadCausalAttention(dim, 'full', head_num)
# ---------------------------------------------------------------------------
def multi_head_causal_attention(x, w_qvk, b_qvk, head_num):
    # TODO(synk): only the 'full' attn_type is implemented; 'linear' /
    # 'linear_attn_elu' variants are not covered by this kernel.
    B, N, D = x.shape
    qkv = qkv_projection(x.reshape(B * N, D), w_qvk, b_qvk.reshape(1, -1))
    qkv = qkv.reshape(B, N, 3 * D)            # contiguous reshape, no data movement
    # Attention kernel reads q/v/k and all heads directly from the packed buffer
    # and writes (B, N, D) concat-head output: no jnp.split, no head transposes.
    return causal_full_attention_fused(qkv, head_num)


# ---------------------------------------------------------------------------
# Pure-JAX reference for verification
# ---------------------------------------------------------------------------
def _reference(x, w, b, head_num):
    B, N, D = x.shape
    qvk = x @ w + b
    q_f, v_f, k_f = jnp.split(qvk, 3, axis=-1)
    d = D // head_num
    to_head = lambda t: t.reshape(B, N, head_num, d).transpose(0, 2, 1, 3)
    q, v, k = to_head(q_f), to_head(v_f), to_head(k_f)
    s = jnp.einsum("bhqd,bhkd->bhqk", q, k) / math.sqrt(d)
    mask = jnp.tril(jnp.ones((N, N), dtype=jnp.float32))
    s = jnp.where(mask == 0, jnp.float32(-1e9), s)
    p = jax.nn.softmax(s, axis=-1)
    o = jnp.einsum("bhqk,bhkd->bhqd", p, v)
    return o.transpose(0, 2, 1, 3).reshape(B, N, D)


if __name__ == "__main__":
    B, N, D, H = 2, 8, 32, 4        # dim=32, head_num=4, seq=8, batch=2
    key = jax.random.PRNGKey(0)
    kx, kw, kb = jax.random.split(key, 3)
    x = jax.random.normal(kx, (B, N, D), dtype=jnp.float32)

    # Deterministic nn.Linear(dim, 3*dim)-style init: U(-1/sqrt(D), 1/sqrt(D))
    bound = 1.0 / math.sqrt(D)
    w_pt = jax.random.uniform(kw, (3 * D, D), minval=-bound, maxval=bound,
                              dtype=jnp.float32)   # PyTorch weight (out, in)
    b_pt = jax.random.uniform(kb, (3 * D,), minval=-bound, maxval=bound,
                              dtype=jnp.float32)
    w = w_pt.T                                      # (D, 3D) for x @ w

    out = multi_head_causal_attention(x, w, b_pt, H)
    out = jax.block_until_ready(out)

    ref = _reference(x, w, b_pt, H)
    assert out.shape == (B, N, D)
    assert jnp.allclose(out, ref, atol=1e-5, rtol=1e-5), "mismatch vs reference"
    print("KERNEL_OK")
</pallas_src>

<mosaic_0001>
module attributes {stable_mosaic.version = 11 : i64} {
  func.func @_qkv_proj_kernel(%arg0: i32, %arg1: i32, %arg2: i32, %arg3: memref<16x32xf32, #tpu.memory_space<vmem>>, %arg4: memref<32x96xf32, #tpu.memory_space<vmem>>, %arg5: memref<1x96xf32, #tpu.memory_space<vmem>>, %arg6: memref<16x96xf32, #tpu.memory_space<vmem>>, %arg7: memref<16x96xf32, #tpu.memory_space<vmem>>) attributes {dimension_semantics = [#tpu.dimension_semantics<parallel>, #tpu.dimension_semantics<parallel>, #tpu.dimension_semantics<arbitrary>], iteration_bounds = array<i64: 1, 1, 1>, scalar_prefetch = 0 : i64, scratch_operands = 1 : i64, tpu.core_type = #tpu.core_type<tc>, window_params = [{transform_indices = @transform_0, window_bounds = array<i64: 16, 32>}, {transform_indices = @transform_1, window_bounds = array<i64: 32, 96>}, {transform_indices = @transform_2, window_bounds = array<i64: 1, 96>}, {transform_indices = @transform_3, window_bounds = array<i64: 16, 96>}]} {
    %c0_i32 = arith.constant 0 : i32
    %0 = arith.cmpi eq, %arg2, %c0_i32 : i32
    %1 = arith.extui %0 : i1 to i32
    %c0_i32_0 = arith.constant 0 : i32
    %2 = arith.cmpi ne, %1, %c0_i32_0 : i32
    scf.if %2 {
      %cst_10 = arith.constant 0.000000e+00 : f32
      %12 = vector.broadcast %cst_10 : f32 to vector<16x96xf32>
      %c0_11 = arith.constant 0 : index
      %c0_12 = arith.constant 0 : index
      %13 = vector.load %arg7[%c0_11, %c0_12] : memref<16x96xf32, #tpu.memory_space<vmem>>, vector<16x96xf32>
      tpu.vector_store %arg7[%c0_11, %c0_12], %12 {strides = array<i32>} : memref<16x96xf32, #tpu.memory_space<vmem>>, vector<16x96xf32>,
    } else {
    }
    %c0 = arith.constant 0 : index
    %c0_1 = arith.constant 0 : index
    %3 = vector.load %arg7[%c0, %c0_1] : memref<16x96xf32, #tpu.memory_space<vmem>>, vector<16x96xf32>
    %c0_2 = arith.constant 0 : index
    %c0_3 = arith.constant 0 : index
    %4 = vector.load %arg3[%c0_2, %c0_3] : memref<16x32xf32, #tpu.memory_space<vmem>>, vector<16x32xf32>
    %c0_4 = arith.constant 0 : index
    %c0_5 = arith.constant 0 : index
    %5 = vector.load %arg4[%c0_4, %c0_5] : memref<32x96xf32, #tpu.memory_space<vmem>>, vector<32x96xf32>
    %cst = arith.constant dense<0.000000e+00> : vector<16x96xf32>
    %6 = tpu.matmul %4, %5, %cst {dimension_numbers = #tpu.dot_dimension_numbers<[1], [0], [0], [1], [0, 0, 1, 1], [], []>} : vector<16x32xf32>, vector<32x96xf32>, vector<16x96xf32> -> vector<16x96xf32>
    %7 = arith.addf %3, %6 : vector<16x96xf32>
    %c0_6 = arith.constant 0 : index
    %c0_7 = arith.constant 0 : index
    %8 = vector.load %arg7[%c0_6, %c0_7] : memref<16x96xf32, #tpu.memory_space<vmem>>, vector<16x96xf32>
    tpu.vector_store %arg7[%c0_6, %c0_7], %7 {strides = array<i32>} : memref<16x96xf32, #tpu.memory_space<vmem>>, vector<16x96xf32>,
    %c0_i32_8 = arith.constant 0 : i32
    %9 = arith.cmpi eq, %arg2, %c0_i32_8 : i32
    %10 = arith.extui %9 : i1 to i32
    %c0_i32_9 = arith.constant 0 : i32
    %11 = arith.cmpi ne, %10, %c0_i32_9 : i32
    scf.if %11 {
      %c0_10 = arith.constant 0 : index
      %c0_11 = arith.constant 0 : index
      %12 = vector.load %arg7[%c0_10, %c0_11] : memref<16x96xf32, #tpu.memory_space<vmem>>, vector<16x96xf32>
      %c0_12 = arith.constant 0 : index
      %c0_13 = arith.constant 0 : index
      %13 = vector.load %arg5[%c0_12, %c0_13] : memref<1x96xf32, #tpu.memory_space<vmem>>, vector<1x96xf32>
      %14 = vector.broadcast %13 : vector<1x96xf32> to vector<16x96xf32>
      %15 = arith.addf %12, %14 : vector<16x96xf32>
      %c0_14 = arith.constant 0 : index
      %c0_15 = arith.constant 0 : index
      %16 = vector.load %arg6[%c0_14, %c0_15] : memref<16x96xf32, #tpu.memory_space<vmem>>, vector<16x96xf32>
      tpu.vector_store %arg6[%c0_14, %c0_15], %15 {strides = array<i32>} : memref<16x96xf32, #tpu.memory_space<vmem>>, vector<16x96xf32>,
    } else {
    }
    return
  }
  func.func @transform_0(%arg0: i32, %arg1: i32, %arg2: i32) -> (i32, i32) {
    %c0_i32 = arith.constant 0 : i32
    return %arg0, %arg2 : i32, i32
  }
  func.func @transform_1(%arg0: i32, %arg1: i32, %arg2: i32) -> (i32, i32) {
    %c0_i32 = arith.constant 0 : i32
    return %arg2, %arg1 : i32, i32
  }
  func.func @transform_2(%arg0: i32, %arg1: i32, %arg2: i32) -> (i32, i32) {
    %c0_i32 = arith.constant 0 : i32
    %c0_i32_0 = arith.constant 0 : i32
    return %c0_i32, %arg1 : i32, i32
  }
  func.func @transform_3(%arg0: i32, %arg1: i32, %arg2: i32) -> (i32, i32) {
    %c0_i32 = arith.constant 0 : i32
    return %arg0, %arg1 : i32, i32
  }
}

</mosaic_0001>

<bundles_post_ra>
// kernel: tpu_custom_call.1
= control target key start
LH: loop header
LB: loop body
LE: loop exit
PB: predicated region body
PF: predicated region fallthrough
CT: control target
= control target key end

     0   :  { %8 = vsyncpa [#allocation4], 0  ;;  %s365_s0 = inlined_call_operand.hbm [shape: f32[16,32], index: 0, kind: input, shape index: {}]   ;;  %s366_s1 = inlined_call_operand.hbm [shape: f32[32,96], index: 1, kind: input, shape index: {}]   ;;  %s367_s2 = inlined_call_operand.vmem [shape: f32[1,96], index: 2, kind: input, shape index: {}]   ;;  %s368_s3 = inlined_call_operand.hbm [shape: f32[16,96], index: 3, kind: output, shape index: {}]  }
   0x1   :  { %9 = vsyncpa [#allocation7], 0 }
   0x2   :  { %10 = vsyncpa [#allocation5], 0  ;;  %s285_s12 = smov [#allocation3]   ;;  %s213_s16 = scalar_lea.hbm %s365_s0, 256 }
   0x3   :  { %s16_s13 = sshll.u32 %s285_s12, 4  ;;  %p214_p0 = scmp.ne.s32.totalorder %s365_s0, %s213_s16  ;;  %s17_s13 = int_to_ptr.vmem [resolvable:$true] %s16_s13 }
   0x4   :  { %p217_p1 = scmp.lt.u32.totalorder %s213_s16, %s365_s0 }
   0x6   :  { %p219_p2 = pnand %p217_p1, %p214_p0 }
   0x8   :  { %222 = shalt.err (!%p219_p2)
}
   0x9   :  { %s223_s21 = scalar_lea.vmem %s17_s13, 256  ;;  %p228_p4 = scmp.lt.s32.totalorder %s17_s13, %s17_s13 }
   0xa   :  { %p224_p3 = scmp.ne.s32.totalorder %s17_s13, %s223_s21  ;;  %p229_p5 = scmp.lt.s32.totalorder %s223_s21, %s223_s21 }
   0xc   :  { %p230_p6 = por %p229_p5, %p228_p4 }
   0xe   :  { %p231_p7 = pnand %p230_p6, %p224_p3 }
  0x10   :  { %234 = shalt.err (!%p231_p7)
}
  0x11   :  { %s286_s22 = smov 128   ;;  %s287_s23 = smov 8  }
  0x12   :  { %22 = dma.hbm_to_vmem [thread:$0]  %s365_s0, 256, %s17_s13, [#allocation4], %s286_s22, %s286_s22, %s287_s23  }
  0x13   :  { %s288_s26 = smov [#allocation6]   ;;  %s235_s30 = scalar_lea.hbm %s366_s1, 512 }
  0x14   :  { %s28_s27 = sshll.u32 %s288_s26, 4  ;;  %p236_p8 = scmp.ne.s32.totalorder %s366_s1, %s235_s30  ;;  %s29_s27 = int_to_ptr.vmem [resolvable:$true] %s28_s27 }
  0x15   :  { %p239_p9 = scmp.lt.u32.totalorder %s235_s30, %s366_s1 }
  0x17   :  { %p241_p10 = pnand %p239_p9, %p236_p8 }
  0x19   :  { %244 = shalt.err (!%p241_p10)
}
  0x1a   :  { %s245_s8 = scalar_lea.vmem %s29_s27, 512  ;;  %p250_p12 = scmp.lt.s32.totalorder %s29_s27, %s29_s27 }
  0x1b   :  { %p246_p11 = scmp.ne.s32.totalorder %s29_s27, %s245_s8  ;;  %p251_p13 = scmp.lt.s32.totalorder %s245_s8, %s245_s8 }
  0x1d   :  { %p252_p0 = por %p251_p13, %p250_p12 }
  0x1f   :  { %p253_p1 = pnand %p252_p0, %p246_p11 }
  0x21   :  { %256 = shalt.err (!%p253_p1)
}
  0x22   :  { %34 = dma.hbm_to_vmem [thread:$0]  %s366_s1, 512, %s29_s27, [#allocation7], %s286_s22, %s286_s22, %s287_s23  }
  0x23   :  { %279 = dma.done.wait [#allocation4], 256  }
  0x24   :  { %280 = vsyncadd [#allocation4], 4294967040 }
  0x25   :  { %281 = dma.done.wait [#allocation7], 512  }
  0x26   :  { %282 = vsyncadd [#allocation7], 4294966784  ;;  %vm47_vm0 = vcmask 785408   ;;  %v289_v0 = vmov 0.0   ;;  %vm58_vm1 = vcmask 261120   ;;  %v54_v1 = vld [vmem:[#allocation6] sm:$0xff] }
  0x27   :  { %49 = vst.msk [vmem:[#allocation2 + $0x8] sm:$0xff] %vm47_vm0, %v289_v0  ;;  %48 = vst.msk [vmem:[#allocation2] sm:$0xff] %vm47_vm0, %v289_v0  ;;  %v55_v2 = vld [vmem:[#allocation6 + $0x8] sm:$0xff]  ;;  %v56_v3 = vld [vmem:[#allocation6 + $0x10] sm:$0xff]  ;;  %s290_s11 = smov [#allocation8]  }
  0x28   :  { %v199_v4 = vpack.c.bf16 %v55_v2, %v54_v1  ;;  %v57_v5 = vld [vmem:[#allocation6 + $0x18] sm:$0xff]  ;;  %v52_v6 = vld [vmem:[#allocation3] sm:$0xff]  ;;  %v181_v15 = vld [vmem:[%s367_s2] ss:$0 sm:$0xff]  ;;  %s166_s12 = sshll.u32 %s290_s11, 4  ;;  %s167_s12 = int_to_ptr.vmem [resolvable:$true] %s166_s12 }
  0x29   :  { %v203_v7 = vpack.c.bf16 %v57_v5, %v56_v3  ;;  %196 = vmatprep.mubr.msk.f32.mxu0 %vm58_vm1, %v52_v6  ;;  %v53_v8 = vld [vmem:[#allocation3 + $0x8] sm:$0xff]  ;;  %s257_s13 = scalar_lea.vmem %s167_s12, 256  ;;  %p262_p3 = scmp.lt.s32.totalorder %s167_s12, %s167_s12 }
  0x2a   :  { %200 = vmatprep.subr.bf16.mxu0 %v199_v4  ;;  %p258_p2 = scmp.ne.s32.totalorder %s167_s12, %s257_s13  ;;  %p263_p4 = scmp.lt.s32.totalorder %s257_s13, %s257_s13 }
  0x2b   :  { %202 = vmatpush3.bf16.msra.mxu0 %v199_v4 }
  0x2c   :  { %204 = vmatprep.subr.bf16.mxu0 %v203_v7  ;;  %p264_p5 = por %p263_p4, %p262_p3 }
  0x2e   :  { %v51_v9 = vld [vmem:[#allocation2 + $0x8] sm:$0xff]  ;;  %v50_v10 = vld [vmem:[#allocation2] sm:$0xff]  ;;  %p265_p6 = pnand %p264_p5, %p258_p2 }
  0x2f   :  { %206 = vmatpush3.bf16.msra.mxu0 %v203_v7 }
  0x32   :  { %197 = vmatmul.mubr.msk.f32.vlgmr.msra.gmra.mrb[0].mxu0 %vm58_vm1, %v53_v8 }
 0x105   :  { %v198_v11 = vpop.f32.mrb[0].mxu0 }
 0x106   :  { %v141_v12 = vadd.f32 %v198_v11, %v51_v9  ;;  %v131_v13 = vpop.f32.mrb[1].mxu0 }
 0x107   :  { %v140_v14 = vadd.f32 %v131_v13, %v50_v10 }
 0x108   :  { %144 = vst.msk [vmem:[#allocation2 + $0x8] sm:$0xff] %vm47_vm0, %v141_v12 }
 0x109   :  { %143 = vst.msk [vmem:[#allocation2] sm:$0xff] %vm47_vm0, %v140_v14 }
 0x10f   :  { %v149_v16 = vld [vmem:[#allocation2 + $0x8] sm:$0xff] }
 0x110   :  { %v148_v17 = vld [vmem:[#allocation2] sm:$0xff]  ;;  %v158_v18 = vadd.f32 %v181_v15, %v149_v16 }
 0x111   :  { %v157_v19 = vadd.f32 %v181_v15, %v148_v17 }
 0x112   :  { %160 = vst.msk [vmem:[#allocation8 + $0x8] sm:$0xff] %vm47_vm0, %v158_v18 }
 0x113   :  { %159 = vst.msk [vmem:[#allocation8] sm:$0xff] %vm47_vm0, %v157_v19 }
 0x114   :  { %268 = shalt.err (!%p265_p6)
}
 0x115   :  { %s269_s15 = scalar_lea.hbm %s368_s3, 256 }
 0x116   :  { %p270_p7 = scmp.ne.s32.totalorder %s368_s3, %s269_s15  ;;  %p273_p8 = scmp.lt.u32.totalorder %s269_s15, %s368_s3 }
 0x118   :  { %p275_p9 = pnand %p273_p8, %p270_p7 }
 0x11a   :  { %278 = shalt.err (!%p275_p9)
}
 0x11b   :  { %172 = dma.vmem_to_hbm [thread:$0]  %s167_s12, 256, %s368_s3, [#allocation5], %s286_s22, %s286_s22, %s287_s23  }
 0x11c   :  { %283 = dma.done.wait [#allocation5], 256  }
 0x11d   :  { %284 = vsyncadd [#allocation5], 4294967040 }
 0x11e   :  { %176 = vsyncpa [#allocation4], 1 }
 0x11f   :  { %177 = vsyncpa [#allocation7], 1 }
 0x120   :  { %178 = vsyncpa [#allocation5], 1 }

</bundles_post_ra>
